<compile_context>
chip_gen: v7x
topology: tpu7x:2x2x1
jax: 0.10.0
libtpu: 0.0.40
codegen_flags: <defaults>
</compile_context>

<pallas_src>
import jax
import jax.numpy as jnp
from jax import lax
from jax.experimental import pallas as pl
from jax.experimental.pallas import tpu as pltpu

_LEAKY_SLOPE = 0.2
_FACTORS = [1.0, 1.0, 1.0, 1.0, 0.5, 0.25, 0.125, 0.0625, 0.03125]


# ---------------------------------------------------------------------------
# tiling helper
# ---------------------------------------------------------------------------
def _choose_hw_tile(hw: int, bytes_per_col: int, budget_bytes: int = 2 << 20) -> int:
    """Pick a lane-dense tile along the flattened spatial (lane) axis.

    Multiples of 128 (unmasked stores) sized so the double-buffered in+out
    block set stays a few MiB -> safe for 16/32 MiB scoped-VMEM defaults on
    v5e/v6e/v7x while keeping the DMA pipeline full.
    """
    if hw % 128 != 0:                 # tiny early/late layers: take the full slab
        return hw
    max_cols = max(128, budget_bytes // max(bytes_per_col, 1))
    tile = 128
    while tile * 2 <= max_cols and hw % (tile * 2) == 0:
        tile *= 2
    return tile


# ---------------------------------------------------------------------------
# WSConv2d (+ optional LeakyReLU) as a fused Pallas GEMM kernel
# ---------------------------------------------------------------------------
def _make_ws_conv_kernel(scale: float, apply_leaky: bool):
    def kernel(p_ref, w_ref, b_ref, o_ref):
        p = p_ref[0].astype(jnp.float32)                          # (F, T)
        w = w_ref[...].astype(jnp.float32)                        # (Cout, F)
        acc = jnp.dot(w, p, preferred_element_type=jnp.float32)   # MXU
        acc = acc * scale + b_ref[...].astype(jnp.float32)        # (Cout,1) bcast
        if apply_leaky:
            acc = jnp.where(acc > 0, acc, _LEAKY_SLOPE * acc)
        o_ref[0] = acc.astype(o_ref.dtype)
    return kernel


def ws_conv2d(x, p, *, leaky):
    """conv2d(x*scale)+bias == scale*conv2d(x)+bias, optionally fused LeakyReLU."""
    w, b, scale, pad = p["w"], p["b"], p["scale"], p["pad"]
    n, cin, h, wdt = x.shape
    cout, _, k, _ = w.shape
    ho, wo = h + 2 * pad - k + 1, wdt + 2 * pad - k + 1
    hw, f = ho * wo, cin * k * k

    # im2col (layout only): (N, Cin*K*K, Ho*Wo), feature order (ci, kh, kw)
    # matches w.reshape(Cout, Cin*K*K).
    xp = jnp.pad(x, ((0, 0), (0, 0), (pad, pad), (pad, pad))) if pad else x
    cols = [xp[:, :, kh:kh + ho, kw:kw + wo] for kh in range(k) for kw in range(k)]
    patches = jnp.stack(cols, axis=2).reshape(n, f, hw)
    w2 = w.reshape(cout, f)
    b2 = b.reshape(cout, 1)

    tile = _choose_hw_tile(hw, bytes_per_col=4 * (f + cout))
    n_t = hw // tile

    out3 = pl.pallas_call(
        _make_ws_conv_kernel(float(scale), leaky),
        out_shape=jax.ShapeDtypeStruct((n, cout, hw), x.dtype),
        grid=(n, n_t),
        in_specs=[
            pl.BlockSpec((1, f, tile), lambda i, j: (i, 0, j)),
            pl.BlockSpec((cout, f), lambda i, j: (0, 0)),
            pl.BlockSpec((cout, 1), lambda i, j: (0, 0)),
        ],
        out_specs=pl.BlockSpec((1, cout, tile), lambda i, j: (i, 0, j)),
        compiler_params=pltpu.CompilerParams(
            dimension_semantics=("parallel", "parallel")),
        cost_estimate=pl.CostEstimate(
            flops=2 * n * cout * f * hw,
            transcendentals=0,
            bytes_accessed=4 * (n * f * hw + cout * f + cout + n * cout * hw)),
    )(patches, w2, b2)
    return out3.reshape(n, cout, ho, wo)


# ---------------------------------------------------------------------------
# AvgPool2d(kernel=2, stride=2)
# ---------------------------------------------------------------------------
def _avg_pool_kernel(a_ref, b_ref, c_ref, d_ref, o_ref):
    s = (a_ref[...].astype(jnp.float32) + b_ref[...].astype(jnp.float32) +
         c_ref[...].astype(jnp.float32) + d_ref[...].astype(jnp.float32))
    o_ref[...] = (0.25 * s).astype(o_ref.dtype)


def avg_pool2x2(x):
    n, c, h, w = x.shape
    ho, wo = h // 2, w // 2
    hw = ho * wo
    quads = [x[:, :, i::2, j::2].reshape(n, c, hw) for i in (0, 1) for j in (0, 1)]
    tile = _choose_hw_tile(hw, bytes_per_col=4 * 5 * c)
    n_t = hw // tile
    spec = pl.BlockSpec((1, c, tile), lambda i, j: (i, 0, j))
    out3 = pl.pallas_call(
        _avg_pool_kernel,
        out_shape=jax.ShapeDtypeStruct((n, c, hw), x.dtype),
        grid=(n, n_t),
        in_specs=[spec] * 4,
        out_specs=spec,
        compiler_params=pltpu.CompilerParams(
            dimension_semantics=("parallel", "parallel")),
    )(*quads)
    return out3.reshape(n, c, ho, wo)


# ---------------------------------------------------------------------------
# fade_in: alpha * out + (1 - alpha) * downscaled
# ---------------------------------------------------------------------------
def _fade_in_kernel(alpha_ref, out_in_ref, down_ref, o_ref):
    alpha = alpha_ref[0]
    a = out_in_ref[...].astype(jnp.float32)
    d = down_ref[...].astype(jnp.float32)
    o_ref[...] = (alpha * a + (1.0 - alpha) * d).astype(o_ref.dtype)


def fade_in(alpha, downscaled, out):
    n, c, h, w = out.shape
    hw = h * w
    tile = _choose_hw_tile(hw, bytes_per_col=4 * 3 * c)
    n_t = hw // tile
    spec = pl.BlockSpec((1, c, tile), lambda i, j: (i, 0, j))
    y3 = pl.pallas_call(
        _fade_in_kernel,
        out_shape=jax.ShapeDtypeStruct((n, c, hw), out.dtype),
        grid=(n, n_t),
        in_specs=[pl.BlockSpec(memory_space=pltpu.MemorySpace.SMEM), spec, spec],
        out_specs=spec,
        compiler_params=pltpu.CompilerParams(
            dimension_semantics=("parallel", "parallel")),
    )(jnp.asarray([alpha], dtype=jnp.float32),
      out.reshape(n, c, hw), downscaled.reshape(n, c, hw))
    return y3.reshape(n, c, h, w)


# ---------------------------------------------------------------------------
# minibatch_std: mean over (C,H,W) of unbiased std over batch, concat as channel
# ---------------------------------------------------------------------------
def _mbstd_kernel(x_ref, o_ref):
    x = x_ref[...].astype(jnp.float32)                       # (N, C*H*W)
    nb = x.shape[0]
    mean = jnp.mean(x, axis=0, keepdims=True)
    var = jnp.sum((x - mean) ** 2, axis=0, keepdims=True) / (nb - 1)
    o_ref[0, 0] = jnp.mean(jnp.sqrt(var))                    # scalar -> SMEM


def minibatch_std(x):
    n, c, h, w = x.shape
    s = pl.pallas_call(
        _mbstd_kernel,
        out_shape=jax.ShapeDtypeStruct((1, 1), jnp.float32),
        in_specs=[pl.BlockSpec(memory_space=pltpu.MemorySpace.VMEM)],
        out_specs=pl.BlockSpec(memory_space=pltpu.MemorySpace.SMEM),
    )(x.reshape(n, c * h * w))[0, 0]
    stat = jnp.broadcast_to(s.astype(x.dtype), (n, 1, h, w))
    return jnp.concatenate([x, stat], axis=1)


# ---------------------------------------------------------------------------
# Discriminator parameters + forward (shared control flow for pallas/reference)
# ---------------------------------------------------------------------------
def build_discriminator_params(key, in_channels, img_channels=3):
    keys = iter(jax.random.split(key, 64))

    def wsconv(cin, cout, k, pad):
        kw, kb = jax.random.split(next(keys))
        return {
            "w": 0.1 * jax.random.normal(kw, (cout, cin, k, k), jnp.float32),
            "b": 0.1 * jax.random.normal(kb, (cout,), jnp.float32),
            "scale": float((2.0 / cin * k * k) ** 0.5),
            "pad": pad,
        }

    prog, rgb = [], []
    for i in range(len(_FACTORS) - 1, 0, -1):
        conv_in = int(in_channels * _FACTORS[i])
        conv_out = int(in_channels * _FACTORS[i - 1])
        prog.append({"c1": wsconv(conv_in, conv_out, 3, 1),
                     "c2": wsconv(conv_out, conv_out, 3, 1)})
        rgb.append(wsconv(img_channels, conv_in, 1, 0))
    rgb.append(wsconv(img_channels, in_channels, 1, 0))      # initial_rgb
    final = [wsconv(in_channels + 1, in_channels, 3, 1),
             wsconv(in_channels, in_channels, 4, 0),
             wsconv(in_channels, 1, 1, 0)]
    return {"prog": prog, "rgb": rgb, "final": final}


def discriminator_forward(params, x, alpha, steps, *, conv, pool, mbstd, fade):
    prog, rgb, final = params["prog"], params["rgb"], params["final"]
    cur_step = len(prog) - steps

    def conv_block(h, blk):
        h = conv(h, blk["c1"], leaky=True)
        h = conv(h, blk["c2"], leaky=True)
        return h

    def final_block(h):
        h = conv(h, final[0], leaky=True)
        h = conv(h, final[1], leaky=True)
        h = conv(h, final[2], leaky=False)
        return h

    out = conv(x, rgb[cur_step], leaky=True)
    if steps == 0:
        out = mbstd(out)
        return final_block(out).reshape(out.shape[0], -1)

    downscaled = conv(pool(x), rgb[cur_step + 1], leaky=True)
    out = pool(conv_block(out, prog[cur_step]))
    out = fade(alpha, downscaled, out)

    for step in range(cur_step + 1, len(prog)):
        out = conv_block(out, prog[step])
        out = pool(out)

    out = mbstd(out)
    out = final_block(out)
    return out.reshape(out.shape[0], -1)


# ---------------------------------------------------------------------------
# pure-JAX reference ops (same control flow, lax.conv) for correctness check
# ---------------------------------------------------------------------------
def _ref_ws_conv(x, p, *, leaky):
    w, b, scale, pad = p["w"], p["b"], p["scale"], p["pad"]
    y = lax.conv_general_dilated(
        x * scale, w, window_strides=(1, 1),
        padding=[(pad, pad), (pad, pad)],
        dimension_numbers=("NCHW", "OIHW", "NCHW"))
    y = y + b.reshape(1, -1, 1, 1)
    return jnp.where(y > 0, y, _LEAKY_SLOPE * y) if leaky else y


def _ref_avg_pool(x):
    n, c, h, w = x.shape
    return x.reshape(n, c, h // 2, 2, w // 2, 2).mean(axis=(3, 5))


def _ref_minibatch_std(x):
    s = jnp.mean(jnp.std(x, axis=0, ddof=1))
    stat = jnp.broadcast_to(s.astype(x.dtype), (x.shape[0], 1, x.shape[2], x.shape[3]))
    return jnp.concatenate([x, stat], axis=1)


def _ref_fade(alpha, downscaled, out):
    return alpha * out + (1.0 - alpha) * downscaled


# ---------------------------------------------------------------------------
if __name__ == "__main__":
    key = jax.random.PRNGKey(0)
    kp, kx = jax.random.split(key)

    in_channels, img_channels, steps, alpha = 32, 3, 2, 0.5
    img_size = 4 * 2 ** steps                               # 16x16 for steps=2
    params = build_discriminator_params(kp, in_channels, img_channels)
    x = jax.random.normal(kx, (2, img_channels, img_size, img_size), dtype=jnp.float32)

    y = discriminator_forward(params, x, alpha, steps,
                              conv=ws_conv2d, pool=avg_pool2x2,
                              mbstd=minibatch_std, fade=fade_in)
    jax.block_until_ready(y)

    y_ref = discriminator_forward(params, x, alpha, steps,
                                  conv=_ref_ws_conv, pool=_ref_avg_pool,
                                  mbstd=_ref_minibatch_std, fade=_ref_fade)
    assert y.shape == (x.shape[0], 1), y.shape
    err = float(jnp.max(jnp.abs(y - y_ref)))
    assert err < 1e-3, f"pallas vs reference mismatch: {err}"
    print("KERNEL_OK")
</pallas_src>

<mosaic_0001>
module attributes {stable_mosaic.version = 11 : i64} {
  func.func @kernel(%arg0: i32, %arg1: i32, %arg2: memref<1x3x256xf32, #tpu.memory_space<vmem>>, %arg3: memref<32x3xf32, #tpu.memory_space<vmem>>, %arg4: memref<32x1xf32, #tpu.memory_space<vmem>>, %arg5: memref<1x32x256xf32, #tpu.memory_space<vmem>>) attributes {dimension_semantics = [#tpu.dimension_semantics<parallel>, #tpu.dimension_semantics<parallel>], iteration_bounds = array<i64: 2, 1>, scalar_prefetch = 0 : i64, scratch_operands = 0 : i64, tpu.core_type = #tpu.core_type<tc>, window_params = [{transform_indices = @transform_0, window_bounds = array<i64: 1, 3, 256>}, {pipeline_mode = #tpu.pipeline_mode<synchronous>, transform_indices = @transform_1, window_bounds = array<i64: 32, 3>}, {pipeline_mode = #tpu.pipeline_mode<synchronous>, transform_indices = @transform_2, window_bounds = array<i64: 32, 1>}, {transform_indices = @transform_3, window_bounds = array<i64: 1, 32, 256>}]} {
    %c0 = arith.constant 0 : index
    %c0_0 = arith.constant 0 : index
    %c0_1 = arith.constant 0 : index
    %0 = vector.load %arg2[%c0, %c0_0, %c0_1] : memref<1x3x256xf32, #tpu.memory_space<vmem>>, vector<1x3x256xf32>
    %1 = vector.shape_cast %0 : vector<1x3x256xf32> to vector<3x256xf32>
    %c0_2 = arith.constant 0 : index
    %c0_3 = arith.constant 0 : index
    %2 = vector.load %arg3[%c0_2, %c0_3] : memref<32x3xf32, #tpu.memory_space<vmem>>, vector<32x3xf32>
    %cst = arith.constant dense<0.000000e+00> : vector<32x256xf32>
    %3 = tpu.matmul %2, %1, %cst {dimension_numbers = #tpu.dot_dimension_numbers<[1], [0], [0], [1], [0, 0, 1, 1], [], []>} : vector<32x3xf32>, vector<3x256xf32>, vector<32x256xf32> -> vector<32x256xf32>
    %cst_4 = arith.constant 0.816496611 : f32
    %4 = vector.broadcast %cst_4 : f32 to vector<32x256xf32>
    %5 = arith.mulf %3, %4 : vector<32x256xf32>
    %c0_5 = arith.constant 0 : index
    %c0_6 = arith.constant 0 : index
    %6 = vector.load %arg4[%c0_5, %c0_6] : memref<32x1xf32, #tpu.memory_space<vmem>>, vector<32x1xf32>
    %7 = vector.broadcast %6 : vector<32x1xf32> to vector<32x256xf32>
    %8 = arith.addf %5, %7 : vector<32x256xf32>
    %cst_7 = arith.constant 0.000000e+00 : f32
    %9 = vector.broadcast %cst_7 : f32 to vector<32x256xf32>
    %10 = arith.cmpf ogt, %8, %9 : vector<32x256xf32>
    %cst_8 = arith.constant 2.000000e-01 : f32
    %11 = vector.broadcast %cst_8 : f32 to vector<32x256xf32>
    %12 = arith.mulf %11, %8 : vector<32x256xf32>
    %13 = arith.select %10, %8, %12 : vector<32x256xi1>, vector<32x256xf32>
    %c0_9 = arith.constant 0 : index
    %c0_10 = arith.constant 0 : index
    %c0_11 = arith.constant 0 : index
    %14 = vector.load %arg5[%c0_9, %c0_10, %c0_11] : memref<1x32x256xf32, #tpu.memory_space<vmem>>, vector<1x32x256xf32>
    %15 = vector.shape_cast %14 : vector<1x32x256xf32> to vector<32x256xf32>
    %16 = vector.shape_cast %13 : vector<32x256xf32> to vector<1x32x256xf32>
    tpu.vector_store %arg5[%c0_9, %c0_10, %c0_11], %16 {strides = array<i32>} : memref<1x32x256xf32, #tpu.memory_space<vmem>>, vector<1x32x256xf32>,
    return
  }
  func.func @transform_0(%arg0: i32, %arg1: i32) -> (i32, i32, i32) {
    %c0_i32 = arith.constant 0 : i32
    %c0_i32_0 = arith.constant 0 : i32
    return %arg0, %c0_i32, %arg1 : i32, i32, i32
  }
  func.func @transform_1(%arg0: i32, %arg1: i32) -> (i32, i32) {
    %c0_i32 = arith.constant 0 : i32
    %c0_i32_0 = arith.constant 0 : i32
    %c0_i32_1 = arith.constant 0 : i32
    return %c0_i32, %c0_i32_0 : i32, i32
  }
  func.func @transform_2(%arg0: i32, %arg1: i32) -> (i32, i32) {
    %c0_i32 = arith.constant 0 : i32
    %c0_i32_0 = arith.constant 0 : i32
    %c0_i32_1 = arith.constant 0 : i32
    return %c0_i32, %c0_i32_0 : i32, i32
  }
  func.func @transform_3(%arg0: i32, %arg1: i32) -> (i32, i32, i32) {
    %c0_i32 = arith.constant 0 : i32
    %c0_i32_0 = arith.constant 0 : i32
    return %arg0, %c0_i32, %arg1 : i32, i32, i32
  }
}

</mosaic_0001>

<bundles_post_ra>
// kernel: tpu_custom_call.1
= control target key start
LH: loop header
LB: loop body
LE: loop exit
PB: predicated region body
PF: predicated region fallthrough
CT: control target
= control target key end

     0   :  { %8 = vsyncpa [#allocation3], 0  ;;  %s828_s0 = inlined_call_operand.vmem [shape: f32[2,3,256], index: 0, kind: input, shape index: {}]   ;;  %s829_s1 = inlined_call_operand.vmem [shape: f32[32,3], index: 1, kind: input, shape index: {}]   ;;  %s830_s2 = inlined_call_operand.vmem [shape: f32[32,1], index: 2, kind: input, shape index: {}]   ;;  %s831_s3 = inlined_call_operand.hbm [shape: f32[2,32,256], index: 3, kind: output, shape index: {}]  }
   0x1   :  { %10 = vsyncpa [#allocation3 + $0x1], 0  ;;  %s671_s12 = smov 0   ;;  %s673_s13 = smov 0  }
   0x2   :  { %s675_s14 = smov 0   ;;  %s677_s15 = smov 0  }
   0x3   :  { %s679_s16 = smov 0   ;;  %s681_s17 = smov 0  }
   0x4 LB: > { %s481_s18 = sadd.s32 4294967295, %s644_s17   ;;  %s482_s19 = sadd.s32 4294967294, %s644_s17   ;;  %s644_s17 = sphi %s681_s17, %s16_s17   ;;  %s640_s16 = sphi %s679_s16, %s838_s16   ;;  %s636_s15 = sphi %s677_s15, %s837_s15   ;;  %s632_s14 = sphi %s675_s14, %s836_s14   ;;  %s628_s13 = sphi %s673_s13, %s835_s13   ;;  %s624_s12 = sphi %s671_s12, %s834_s12  }
   0x5   : > { %s28_s20 = sadd.s32 1, %s640_s16  ;;  %s107_s21 = sadd.s32 1, %s632_s14 }
   0x6   : > { %p30_p0 = scmp.ge.s32.totalorder %s28_s20, 2  ;;  %p117_p1 = scmp.ne.s32.totalorder %s632_s14, %s628_s13 }
   0x7   : > { %p118_p2 = scmp.eq.s32.totalorder %s481_s18, 1  ;;  %p123_p3 = scmp.ne.s32.totalorder %s628_s13, %s624_s12 }
   0x8   : > { %s840_s20 = smov (%p30_p0, %s28_s20), 0  ;;  %p124_p5 = scmp.eq.s32.totalorder %s482_s19, 1 }
   0x9   : > { %p711_p4 = por %p118_p2, %p117_p1  ;;  %s102_s23 = ssub.s32 %s640_s16, %s840_s20 }
   0xa   : > { %p485_p6 = scmp.ge.s32.totalorder %s644_s17, 1  ;;  %p105_p7 = scmp.eq.s32.totalorder %s102_s23, 0 }
   0xb   : > { %p718_p8 = por %p124_p5, %p123_p3  ;;  %p161_p9 = scmp.lt.s32.totalorder %s644_s17, 3 }
   0xc   : > { %s724_s25 = scalar_select %p105_p7, %s632_s14, %s107_s21  }
   0xd   : > { %p162_p10 = pnand %p485_p6, %p161_p9 }
   0xe   : > { %p190_p11 = scmp.lt.s32.totalorder (!%p162_p10), %s636_s15, 1  ;;  %v646_v0 = vmov (!%p162_p10), 0.0   ;;  %v324_v1 = vld [vmem:[%s830_s2 + $0x10] sm:$0xff] (!%p162_p10)  ;;  %v647_v2 = vmov (!%p162_p10), 0   ;;  %v322_v3 = vld [vmem:[%s830_s2] sm:$0xff] (!%p162_p10)  ;;  %v325_v4 = vld [vmem:[%s830_s2 + $0x18] sm:$0xff] (!%p162_p10) }
   0xf   : > { %165 = sbr.rel (%p162_p10) target bundleno = 272 (0x110), region = 32  ;;  %289 = vmatprep.mubr.f32.mxu0 (!%p162_p10), %v646_v0  ;;  %301 = vmatprep.mubr.f32.mxu1 (!%p162_p10), %v646_v0  ;;  %v323_v5 = vld [vmem:[%s830_s2 + $0x8] sm:$0xff] (!%p162_p10)  ;;  %vm220_vm0 = vcmask (!%p162_p10), 1042432   ;;  %v201_v8 = vld [vmem:[%s829_s1] sm:$0xff] (!%p162_p10)  ;;  %vm207_vm1 = vcmask (!%p162_p10), 23552   ;;  %v203_v9 = vld [vmem:[%s829_s1 + $0x10] sm:$0xff] (!%p162_p10) }
  0x10   : > { %564 = vset.pattern.permute.xlu1 (!%p162_p10), %v647_v2  ;;  %563 = vset.pattern.permute.xlu0 (!%p162_p10), %v647_v2  ;;  %v202_v10 = vld [vmem:[%s829_s1 + $0x8] sm:$0xff] (!%p162_p10)  ;;  %v204_v11 = vld [vmem:[%s829_s1 + $0x18] sm:$0xff] (!%p162_p10)  ;;  %s186_s30 = sand.u32 (!%p162_p10), 1, %s628_s13   ;;  %s501_s6 = sshll.u32 (!%p162_p10), %s636_s15, 10 }
  0x11   : > { %338 = vperm.xlu1 (!%p162_p10), %564, %v324_v1   ;;  %328 = vperm.xlu0 (!%p162_p10), %563, %v322_v3   ;;  %s782_s10 = scalar_lea.sflag (!%p162_p10), [#allocation3], %s186_s30  ;;  %s648_s18 = smov (!%p162_p10), [#allocation2]  }
  0x12   : > { %s570_s19 = sshll.u32 (!%p162_p10), %s648_s18, 4  ;;  %s571_s19 = int_to_ptr.vmem [resolvable:$false] %s570_s19 }
  0x13   : > { %s572_s21 = scalar_lea.vmem (!%p162_p10), %s571_s19, 2048 }
  0x15   : > { %343 = vperm.xlu1 (!%p162_p10), %564, %v325_v4   ;;  %333 = vperm.xlu0 (!%p162_p10), %563, %v323_v5  }
  0x16   : > { %s191_s28 = scalar_select %p190_p11, %s636_s15, 1 }
  0x17   : > { %s772_s15 = scalar_lea.hbm %s831_s3, %s501_s6 }
  0x18   : > { %s500_s4 = sshll.u32 %s191_s28, 3 }
  0x19   : > { %s197_s11 = scalar_lea.vmem %s828_s0, %s500_s4  ;;  %s758_s4 = sshll.u32 %s186_s30, 6 }
  0x1a   : > { %v200_v6 = vld [vmem:[%s197_s11] sm:$0x77]  ;;  %s761_s5 = scalar_lea.vmem [#allocation2], %s758_s4 }
  0x1b   : > { %v206_v7 = vcombine.high %v200_v6, %v200_v6  ;;  %s402_s7 = sshll.u32 %s761_s5, 4  ;;  %s774_s7 = int_to_ptr.vmem [resolvable:$true] %s402_s7 }
  0x1c   : > { %s566_s11 = scalar_lea.vmem %s774_s7, 1024  ;;  %p573_p1 = scmp.lt.s32.totalorder %s774_s7, %s571_s19 }
  0x1d   : > { %489 = vmatprep.subr.msk.mxu0 %vm220_vm0, %v206_v7  ;;  %502 = vmatprep.subr.msk.mxu1 %vm220_vm0, %v206_v7  ;;  %p567_p12 = scmp.ne.s32.totalorder %s774_s7, %s566_s11  ;;  %p574_p2 = scmp.lt.s32.totalorder %s572_s21, %s566_s11 }
  0x1e   : > { %490 = vmatpush1.msk.msra.mxu0 %vm220_vm0, %v200_v6  ;;  %503 = vmatpush1.msk.msra.mxu1 %vm220_vm0, %v200_v6 }
  0x1f   : > { %491 = vmatmul.mubr.msk.f32.vlgmr.msra.gmra.mrb[0].mxu0 %vm207_vm1, %v201_v8  ;;  %493 = vmatmul.mubr.msk.f32.vlgmr.msra.gmra.mrb[0].mxu1 %vm207_vm1, %v203_v9  ;;  %p568_p13 = pnand %p567_p12, %p711_p4  ;;  %p575_p3 = por %p574_p2, %p573_p1 }
  0x20   : > { %295 = vmatprep.mubr.f32.mxu0 %v646_v0  ;;  %307 = vmatprep.mubr.f32.mxu1 %v646_v0 }
  0x21   : > { %p569_p0 = pneg %p568_p13 }
  0x23   : > { %492 = vmatmul.mubr.msk.f32.gmra.mrb[2].mxu0 %vm207_vm1, %v202_v10  ;;  %494 = vmatmul.mubr.msk.f32.gmra.mrb[2].mxu1 %vm207_vm1, %v204_v11  ;;  %p576_p5 = pnand %p575_p3, %p569_p0 }
  0x90   : > { %v339_v18 = vpop.permute.xlu1 %338  ;;  %v329_v19 = vpop.permute.xlu0 %328 }
  0x94   : > { %v344_v40 = vpop.permute.xlu1 %343  ;;  %v334_v41 = vpop.permute.xlu0 %333 }
  0xf2   : > { %v291_v12 = vpop.f32.mrb[0].mxu0  ;;  %v303_v13 = vpop.f32.mrb[0].mxu1 }
  0xf3   : > { %v314_v14 = vmul.f32 0.8164966, %v291_v12  ;;  %v318_v15 = vmul.f32 0.8164966, %v303_v13  ;;  %v293_v16 = vpop.f32.mrb[1].mxu0  ;;  %v305_v17 = vpop.f32.mrb[1].mxu1 }
  0xf4   : > { %v315_v20 = vmul.f32 0.8164966, %v293_v16  ;;  %v319_v21 = vmul.f32 0.8164966, %v305_v17 }
  0xf5   : > { %v346_v22 = vadd.f32 %v329_v19, %v314_v14  ;;  %v350_v23 = vadd.f32 %v339_v18, %v318_v15 }
  0xf6   : > { %v347_v24 = vadd.f32 %v329_v19, %v315_v20  ;;  %v351_v25 = vadd.f32 %v339_v18, %v319_v21  ;;  %v297_v26 = vpop.f32.mrb[2].mxu0  ;;  %v309_v27 = vpop.f32.mrb[2].mxu1 }
  0xf7   : > { %vm354_vm2 = vcmp.gt.f32.partialorder %v346_v22, 0.0  ;;  %v362_v28 = vmul.f32 0.2, %v346_v22  ;;  %vm358_vm3 = vcmp.gt.f32.partialorder %v350_v23, 0.0  ;;  %v366_v29 = vmul.f32 0.2, %v350_v23 }
  0xf8   : > { %vm355_vm4 = vcmp.gt.f32.partialorder %v347_v24, 0.0  ;;  %v363_v30 = vmul.f32 0.2, %v347_v24  ;;  %vm359_vm5 = vcmp.gt.f32.partialorder %v351_v25, 0.0  ;;  %v367_v31 = vmul.f32 0.2, %v351_v25 }
  0xf9   : > { %v370_v32 = vsel %vm354_vm2, %v346_v22, %v362_v28  ;;  %v374_v33 = vsel %vm358_vm3, %v350_v23, %v366_v29  ;;  %v316_v34 = vmul.f32 0.8164966, %v297_v26  ;;  %v320_v35 = vmul.f32 0.8164966, %v309_v27  ;;  %v299_v36 = vpop.f32.mrb[3].mxu0  ;;  %v311_v37 = vpop.f32.mrb[3].mxu1 }
  0xfa   : > { %378 = vst [vmem:[%s761_s5] sm:$0xff] %v370_v32  ;;  %382 = vst [vmem:[%s761_s5 + $0x20] sm:$0xff] %v374_v33  ;;  %v371_v38 = vsel %vm355_vm4, %v347_v24, %v363_v30  ;;  %v375_v39 = vsel %vm359_vm5, %v351_v25, %v367_v31  ;;  %v317_v42 = vmul.f32 0.8164966, %v299_v36  ;;  %v321_v43 = vmul.f32 0.8164966, %v311_v37 }
  0xfb   : > { %379 = vst [vmem:[%s761_s5 + $0x8] sm:$0xff] %v371_v38  ;;  %383 = vst [vmem:[%s761_s5 + $0x28] sm:$0xff] %v375_v39  ;;  %v348_v44 = vadd.f32 %v334_v41, %v316_v34  ;;  %v352_v45 = vadd.f32 %v344_v40, %v320_v35 }
  0xfc   : > { %v349_v46 = vadd.f32 %v334_v41, %v317_v42  ;;  %v353_v47 = vadd.f32 %v344_v40, %v321_v43 }
  0xfd   : > { %vm356_vm6 = vcmp.gt.f32.partialorder %v348_v44, 0.0  ;;  %v364_v48 = vmul.f32 0.2, %v348_v44  ;;  %vm360_vm7 = vcmp.gt.f32.partialorder %v352_v45, 0.0  ;;  %v368_v49 = vmul.f32 0.2, %v352_v45 }
  0xfe   : > { %vm357_vm8 = vcmp.gt.f32.partialorder %v349_v46, 0.0  ;;  %v365_v50 = vmul.f32 0.2, %v349_v46  ;;  %vm361_vm9 = vcmp.gt.f32.partialorder %v353_v47, 0.0  ;;  %v369_v51 = vmul.f32 0.2, %v353_v47 }
  0xff   : > { %v372_v52 = vsel %vm356_vm6, %v348_v44, %v364_v48  ;;  %v376_v53 = vsel %vm360_vm7, %v352_v45, %v368_v49 }
 0x100   : > { %380 = vst [vmem:[%s761_s5 + $0x10] sm:$0xff] %v372_v52  ;;  %384 = vst [vmem:[%s761_s5 + $0x30] sm:$0xff] %v376_v53  ;;  %v373_v54 = vsel %vm357_vm8, %v349_v46, %v365_v50  ;;  %v377_v55 = vsel %vm361_vm9, %v353_v47, %v369_v51 }
 0x101   : > { %381 = vst [vmem:[%s761_s5 + $0x18] sm:$0xff] %v373_v54  ;;  %385 = vst [vmem:[%s761_s5 + $0x38] sm:$0xff] %v377_v55 }
 0x102   : > { %579 = shalt.err (!%p576_p5)
}
 0x103   : > { %s580_s23 = scalar_lea.hbm %s772_s15, 1024  ;;  %s584_s28 = scalar_lea.hbm %s831_s3, 2048 }
 0x104   : > { %p581_p6 = scmp.ne.s32.totalorder %s772_s15, %s580_s23  ;;  %p585_p10 = scmp.lt.u32.totalorder %s772_s15, %s831_s3 }
 0x105   : > { %p586_p11 = scmp.lt.u32.totalorder %s584_s28, %s580_s23  ;;  %p588_p13 = scmp.lt.u32.totalorder %s580_s23, %s772_s15 }
 0x106   : > { %p582_p7 = pnand %p581_p6, %p711_p4 }
 0x107   : > { %p587_p12 = por %p586_p11, %p585_p10 }
 0x108   : > { %p583_p9 = pneg %p582_p7 }
 0x109   : > { %p589_p0 = por %p588_p13, %p587_p12 }
 0x10b   : > { %p590_p1 = pnand %p589_p0, %p583_p9 }
 0x10d   : > { %593 = shalt.err (!%p590_p1)
}
 0x10e   : > { %s649_s4 = smov 256   ;;  %s650_s5 = smov 16  }
 0x10f   : > { %504 = dma.vmem_to_hbm [thread:$0]  (%p711_p4), %s774_s7, 1024, %s772_s15, %s782_s10, %s649_s4, %s649_s4, %s650_s5  }
 0x110 PF: > { %p510_p2 = scmp.ge.s32.totalorder %s644_s17, 2  ;;  %s417_s6 = sand.u32 1, %s624_s12  }
 0x111   : > { %s418_s8 = scalar_lea.sflag [#allocation3], %s417_s6 }
 0x112   : > { %p507_p3 = pnand %p510_p2, %p718_p8 }
 0x114   : > { %619 = dma.done.wait (!%p507_p3), %s418_s8, 1024  }
 0x115   : > { %621 = vsyncadd (!%p507_p3), %s418_s8, 4294966272  ;;  %s16_s17 = sadd.s32 1, %s644_s17   ;;  %s834_s12 = smov %s628_s13 }
 0x116   : > { %p13_p5 = scmp.ge.s32.totalorder %s16_s17, 4   ;;  %s835_s13 = smov %s632_s14 }
 0x117   : > { %s836_s14 = smov %s724_s25  ;;  %s837_s15 = smov %s640_s16 }
 0x118   : > { %s838_s16 = smov %s840_s20  ;;  %15 = sbr.rel (!%p13_p5) target bundleno = 4 (0x4), region = 67 }
 0x11f   :  { %423 = vsyncpa [#allocation3], 1 }
 0x120   :  { %425 = vsyncpa [#allocation3 + $0x1], 1 }

</bundles_post_ra>
